<compile_context>
chip_gen: v6e
topology: v6e:2x2x1
jax: 0.10.0
libtpu: 0.0.40
codegen_flags: <defaults>
</compile_context>

<pallas_src>
import functools

import jax
import jax.numpy as jnp
from jax.experimental import pallas as pl
from jax.experimental.pallas import tpu as pltpu


def _round_up(a: int, b: int) -> int:
    return ((a + b - 1) // b) * b


def _gradient_loss_kernel(mask_ref, x_ref, out_ref, *, W: int, penalty: str):
    """One grid step: partial sums of the H-diff and W-diff terms for tb flat rows.

    mask_ref: (1, L) f32 {0,1} mask killing row-crossing positions of the flat W-diff.
    x_ref:    (tb, L) input rows (L = H*W), any float dtype (upcast to f32).
    out_ref:  (1, 2, 128) f32 partial sums: row 0 = H-diff sum, row 1 = W-diff sum,
              each scalar broadcast across a lane-dense 128-wide row.
    """
    x = x_ref[...].astype(jnp.float32)          # (tb, L)
    L = x.shape[-1]
    H = L // W

    # ---- H-direction diff: flat[i + W] - flat[i], all (H-1)*W entries valid ----
    if H > 1:
        dh = x[:, W:] - x[:, :-W]               # (tb, L - W)
        if penalty == "l2":
            dh = dh * dh                        # abs redundant under squaring
        else:
            dh = jnp.abs(dh)
        sdx = jnp.sum(dh)
    else:
        sdx = jnp.float32(0.0)

    # ---- W-direction diff: flat[i + 1] - flat[i], mask row-crossing entries ----
    if L > 1:
        dw = x[:, 1:] - x[:, :-1]               # (tb, L - 1)
        if penalty == "l2":
            dw = dw * dw
        else:
            dw = jnp.abs(dw)
        dw = dw * mask_ref[:, : L - 1]          # (1, L-1) sublane-broadcast multiply
        sdz = jnp.sum(dw)
    else:
        sdz = jnp.float32(0.0)

    out_ref[0] = jnp.concatenate(
        [jnp.broadcast_to(sdx, (1, 128)), jnp.broadcast_to(sdz, (1, 128))], axis=0
    ).astype(jnp.float32)


def gradient_loss(s: jax.Array, penalty: str = "l2") -> jax.Array:
    """Pallas equivalent of Gradient_loss().forward(s, penalty). Returns a scalar f32."""
    N, C, H, W = s.shape
    NC = N * C
    L = H * W
    x = s.reshape(NC, L)                        # contiguous reshape: free

    itemsize = jnp.dtype(s.dtype).itemsize

    # ---- generation-aware VMEM budget -------------------------------------------
    try:
        vmem_cap = int(pltpu.get_tpu_info().vmem_capacity_bytes)
    except Exception:
        vmem_cap = 64 * 1024 * 1024             # conservative (v7x per-TensorCore)

    # Per streamed row: 2x double-buffered input at its dtype + ~6 f32-sized working
    # intermediates (upcast, two shifted slice copies, dh, dw, masked dw).
    row_work = 2 * L * itemsize + 6 * L * 4
    row_in = L * itemsize
    tb_vmem = max(1, (int(0.7 * vmem_cap)) // row_work)
    tb_dma = max(1, (8 * 1024 * 1024) // row_in)   # ~8 MiB input DMA per step is plenty
    tb = min(tb_vmem, tb_dma)

    # Keep >= 2 grid steps when there is enough work so the "parallel" axis can split
    # across both v7x TensorCores (harmless on v5e/v6e).
    if NC >= 16:
        tb = min(tb, _round_up((NC + 1) // 2, 8))
    tb = max(1, min(tb, NC))
    tb = _round_up(tb, 8)                       # sublane-aligned second-to-last block dim

    ncpad = _round_up(NC, tb)
    if ncpad != NC:
        # Zero rows contribute exactly 0 to both sums; denominators use the real NC.
        x = jnp.pad(x, ((0, ncpad - NC), (0, 0)))
    grid = ncpad // tb

    footprint = tb * row_work + 4 * L * 4 + (1 << 20)     # + mask + misc headroom
    vmem_limit = int(min(int(0.9 * vmem_cap), max(32 * 1024 * 1024, footprint)))

    # {0,1} mask removing the row-crossing entries of the flat W-diff (built with plain
    # XLA outside the kernel; avoids vectorized integer modulo inside Mosaic).
    col = jnp.arange(L, dtype=jnp.int32)
    wmask = ((col % max(W, 1)) != (W - 1)).astype(jnp.float32).reshape(1, L)

    partials = pl.pallas_call(
        functools.partial(_gradient_loss_kernel, W=W, penalty=penalty),
        out_shape=jax.ShapeDtypeStruct((grid, 2, 128), jnp.float32),
        grid=(grid,),
        in_specs=[
            pl.BlockSpec((1, L), lambda i: (0, 0)),    # mask: same tiny block every step
            pl.BlockSpec((tb, L), lambda i: (i, 0)),   # streamed, lane-dense input rows
        ],
        out_specs=pl.BlockSpec((1, 2, 128), lambda i: (i, 0, 0)),
        compiler_params=pltpu.CompilerParams(
            dimension_semantics=("parallel",),
            vmem_limit_bytes=vmem_limit,
        ),
    )(wmask, x)

    sum_dx = jnp.sum(partials[:, 0, 0])
    sum_dz = jnp.sum(partials[:, 1, 0])

    n_dx = NC * (H - 1) * W
    n_dz = NC * H * (W - 1)
    mean_dx = sum_dx / jnp.float32(n_dx)        # 0/0 -> NaN, matching torch.mean(empty)
    mean_dz = sum_dz / jnp.float32(n_dz)
    return (mean_dx + mean_dz) * 0.5


def _gradient_loss_ref(s: jax.Array, penalty: str = "l2") -> jax.Array:
    """Pure-JAX reference mirroring the PyTorch forward."""
    s = s.astype(jnp.float32)
    dx = jnp.abs(s[:, :, 1:, :] - s[:, :, :-1, :])
    dz = jnp.abs(s[:, :, :, 1:] - s[:, :, :, :-1])
    if penalty == "l2":
        dx = dx * dx
        dz = dz * dz
    return (jnp.mean(dx) + jnp.mean(dz)) / 2.0


if __name__ == "__main__":
    # Gradient_loss has no parameters; only an input deformation field s (NCHW).
    key = jax.random.PRNGKey(0)
    x = jax.random.normal(key, (2, 4, 16, 16), dtype=jnp.float32)

    out = jax.jit(gradient_loss)(x)
    out = jax.block_until_ready(out)
    ref = _gradient_loss_ref(x)
    assert jnp.allclose(out, ref, rtol=1e-5, atol=1e-6), (out, ref)

    out_l1 = jax.jit(functools.partial(gradient_loss, penalty="l1"))(x)
    out_l1 = jax.block_until_ready(out_l1)
    ref_l1 = _gradient_loss_ref(x, penalty="l1")
    assert jnp.allclose(out_l1, ref_l1, rtol=1e-5, atol=1e-6), (out_l1, ref_l1)

    print("KERNEL_OK")
</pallas_src>

<mosaic_0001>
module attributes {stable_mosaic.version = 11 : i64} {
  func.func @_gradient_loss_kernel(%arg0: i32, %arg1: memref<1x256xf32, #tpu.memory_space<vmem>>, %arg2: memref<8x256xf32, #tpu.memory_space<vmem>>, %arg3: memref<1x2x128xf32, #tpu.memory_space<vmem>>) attributes {dimension_semantics = [#tpu.dimension_semantics<parallel>], iteration_bounds = array<i64: 1>, scalar_prefetch = 0 : i64, scratch_operands = 0 : i64, tpu.core_type = #tpu.core_type<tc>, window_params = [{pipeline_mode = #tpu.pipeline_mode<synchronous>, transform_indices = @transform_0, window_bounds = array<i64: 1, 256>}, {transform_indices = @transform_1, window_bounds = array<i64: 8, 256>}, {transform_indices = @transform_2, window_bounds = array<i64: 1, 2, 128>}]} {
    %c0 = arith.constant 0 : index
    %c0_0 = arith.constant 0 : index
    %0 = vector.load %arg2[%c0, %c0_0] : memref<8x256xf32, #tpu.memory_space<vmem>>, vector<8x256xf32>
    %1 = vector.extract_strided_slice %0 {offsets = [0, 16], sizes = [8, 240], strides = [1, 1]} : vector<8x256xf32> to vector<8x240xf32>
    %2 = vector.extract_strided_slice %0 {offsets = [0, 0], sizes = [8, 240], strides = [1, 1]} : vector<8x256xf32> to vector<8x240xf32>
    %3 = arith.subf %1, %2 : vector<8x240xf32>
    %4 = arith.mulf %3, %3 : vector<8x240xf32>
    %5 = vector.shape_cast %4 : vector<8x240xf32> to vector<1x8x240xf32>
    %cst = arith.constant dense<0.000000e+00> : vector<1xf32>
    %6 = vector.multi_reduction <add>, %5, %cst [1, 2] : vector<1x8x240xf32> to vector<1xf32>
    %7 = vector.shape_cast %6 : vector<1xf32> to vector<1x1x1xf32>
    %8 = vector.extract %7[0, 0, 0] : f32 from vector<1x1x1xf32>
    %9 = vector.extract_strided_slice %0 {offsets = [0, 1], sizes = [8, 255], strides = [1, 1]} : vector<8x256xf32> to vector<8x255xf32>
    %10 = vector.extract_strided_slice %0 {offsets = [0, 0], sizes = [8, 255], strides = [1, 1]} : vector<8x256xf32> to vector<8x255xf32>
    %11 = arith.subf %9, %10 : vector<8x255xf32>
    %12 = arith.mulf %11, %11 : vector<8x255xf32>
    %c0_1 = arith.constant 0 : index
    %c0_2 = arith.constant 0 : index
    %13 = vector.load %arg1[%c0_1, %c0_2] : memref<1x256xf32, #tpu.memory_space<vmem>>, vector<1x255xf32>
    %14 = vector.broadcast %13 : vector<1x255xf32> to vector<8x255xf32>
    %15 = arith.mulf %12, %14 : vector<8x255xf32>
    %16 = vector.shape_cast %15 : vector<8x255xf32> to vector<1x8x255xf32>
    %cst_3 = arith.constant dense<0.000000e+00> : vector<1xf32>
    %17 = vector.multi_reduction <add>, %16, %cst_3 [1, 2] : vector<1x8x255xf32> to vector<1xf32>
    %18 = vector.shape_cast %17 : vector<1xf32> to vector<1x1x1xf32>
    %19 = vector.extract %18[0, 0, 0] : f32 from vector<1x1x1xf32>
    %20 = vector.broadcast %8 : f32 to vector<1x128xf32>
    %21 = vector.broadcast %19 : f32 to vector<1x128xf32>
    %22 = tpu.concatenate %20, %21 in 0 : vector<1x128xf32>, vector<1x128xf32> -> vector<2x128xf32>
    %c0_4 = arith.constant 0 : index
    %c0_5 = arith.constant 0 : index
    %c0_6 = arith.constant 0 : index
    %23 = vector.load %arg3[%c0_4, %c0_5, %c0_6] : memref<1x2x128xf32, #tpu.memory_space<vmem>>, vector<1x2x128xf32>
    %24 = vector.shape_cast %23 : vector<1x2x128xf32> to vector<2x128xf32>
    %25 = vector.shape_cast %22 : vector<2x128xf32> to vector<1x2x128xf32>
    tpu.vector_store %arg3[%c0_4, %c0_5, %c0_6], %25 {strides = array<i32>} : memref<1x2x128xf32, #tpu.memory_space<vmem>>, vector<1x2x128xf32>,
    return
  }
  func.func @transform_0(%arg0: i32) -> (i32, i32) {
    %c0_i32 = arith.constant 0 : i32
    %c0_i32_0 = arith.constant 0 : i32
    %c0_i32_1 = arith.constant 0 : i32
    return %c0_i32, %c0_i32_0 : i32, i32
  }
  func.func @transform_1(%arg0: i32) -> (i32, i32) {
    %c0_i32 = arith.constant 0 : i32
    %c0_i32_0 = arith.constant 0 : i32
    return %arg0, %c0_i32 : i32, i32
  }
  func.func @transform_2(%arg0: i32) -> (i32, i32, i32) {
    %c0_i32 = arith.constant 0 : i32
    %c0_i32_0 = arith.constant 0 : i32
    %c0_i32_1 = arith.constant 0 : i32
    return %arg0, %c0_i32, %c0_i32_0 : i32, i32, i32
  }
}

</mosaic_0001>

<bundles_post_ra>
// kernel: gradient_loss.1
= control target key start
LH: loop header
LB: loop body
LE: loop exit
PB: predicated region body
PF: predicated region fallthrough
CT: control target
= control target key end

     0   :  { %v62_v0 = vlaneseq  ;;  %s117_s11 = smov 16   ;;  %s118_s12 = smov 1   ;;  %vm19_vm0 = vcmask 130048   ;;  %vm52_vm1 = vcmask 7168   ;;  %vm33_vm2 = vcmask 916480   ;;  %s150_s1 = inlined_call_operand.vmem [shape: f32[8,256], index: 1, kind: input, shape index: {}]   ;;  %s151_s0 = inlined_call_operand.vmem [shape: f32[1,256], index: 0, kind: input, shape index: {}]   ;;  %s152_s2 = inlined_call_operand.vmem [shape: f32[1,2,128], index: 2, kind: output, shape index: {}]  }
   0x1   :  { %v11_v1 = vld [vmem:[%s150_s1] sm:$0xff]  ;;  %v12_v3 = vld [vmem:[%s150_s1 + $0x8] sm:$0xff]  ;;  %s120_s1 = smov 127   ;;  %vm85_vm3 = vcmask 1039360   ;;  %vm102_vm4 = vcmask 1040384  }
   0x2   :  { %15 = vrot.lane.b32.xlu1 %v11_v1, %s117_s11  ;;  %48 = vrot.lane.b32.xlu0 %v11_v1, %s118_s12  ;;  %v63_v2 = vshrl.u32 %v62_v0, 7  ;;  %v60_v4 = vld [vmem:[%s151_s0] sm:$0x3]  ;;  %s119_s0 = smov 112  }
   0x4   :  { %v68_v5 = vsub.s32 1, %v63_v2  ;;  %v64_v6 = vsub.s32 0, %v63_v2 }
   0x6   :  { %17 = vrot.lane.b32.xlu1 %v12_v3, %s117_s11  ;;  %50 = vrot.lane.b32.xlu0 %v12_v3, %s118_s12  ;;  %v69_v7 = vrot.slane %v60_v4, %v68_v5  ;;  %v65_v8 = vrot.slane %v60_v4, %v64_v6 }
   0xa   :  { %72 = vrot.lane.b32.xlu1 %v69_v7, %s118_s12  ;;  %70 = vrot.lane.b32.xlu0 %v65_v8, %s118_s12 }
  0x74   :  { %v16_v9 = vpop.permute.xlu1 %15  ;;  %v49_v10 = vpop.permute.xlu0 %48 }
  0x75   :  { %v23_v11 = vsub.f32 %v11_v1, %v16_v9  ;;  %v56_v13 = vsub.f32 %v11_v1, %v49_v10 }
  0x77   :  { %v25_v12 = vmul.f32 %v23_v11, %v23_v11  ;;  %v58_v20 = vmul.f32 %v56_v13, %v56_v13 }
  0x78   :  { %v18_v14 = vpop.permute.xlu1 %17  ;;  %v51_v15 = vpop.permute.xlu0 %50 }
  0x79   :  { %v20_v16 = vsel %vm19_vm0, %v16_v9, %v18_v14  ;;  %v53_v17 = vsel %vm52_vm1, %v49_v10, %v51_v15  ;;  %29 = vrot.lane.b32.xlu0 %v25_v12, %s119_s0 }
  0x7a   :  { %v24_v18 = vsub.f32 %v12_v3, %v20_v16  ;;  %v57_v19 = vsub.f32 %v12_v3, %v53_v17 }
  0x7c   :  { %v26_v21 = vmul.f32 %v24_v18, %v24_v18  ;;  %v59_v22 = vmul.f32 %v57_v19, %v57_v19  ;;  %v73_v23 = vpop.permute.xlu1 %72  ;;  %v71_v24 = vpop.permute.xlu0 %70 }
  0x7d   :  { %v74_v25 = vsel %vm52_vm1, %v71_v24, %v73_v23  ;;  %v77_v26 = vmul.f32 %v71_v24, %v58_v20 }
  0x7e   :  { %31 = vrot.lane.b32.xlu1 %v26_v21, %s119_s0  ;;  %v78_v27 = vmul.f32 %v74_v25, %v59_v22 }
  0x7f   :  { %81 = vrot.lane.b32.xlu0 %v77_v26, %s120_s1 }
  0x82   :  { %83 = vrot.lane.b32.xlu1 %v78_v27, %s120_s1 }
  0xeb   :  { %v30_v28 = vpop.permute.xlu0 %29 }
  0xf0   :  { %v32_v29 = vpop.permute.xlu1 %31 }
  0xf1   :  { %v34_v30 = vsel %vm33_vm2, %v30_v28, %v32_v29  ;;  %v37_v31 = vsel %vm33_vm2, %v32_v29, 0.0  ;;  %v82_v33 = vpop.permute.xlu0 %81 }
  0xf2   :  { %v38_v32 = vadd.f32 %v37_v31, %v34_v30 }
  0xf4   :  { %v84_v34 = vpop.permute.xlu1 %83  ;;  %39 = vadd.xlane.f32.xlu0 %v38_v32 }
  0xf5   :  { %v86_v35 = vsel %vm85_vm3, %v82_v33, %v84_v34  ;;  %v89_v36 = vsel %vm85_vm3, %v84_v34, 0.0 }
  0xf6   :  { %v90_v37 = vadd.f32 %v89_v36, %v86_v35 }
  0xf8   :  { %91 = vadd.xlane.f32.xlu1 %v90_v37 }
 0x17d   :  { %v40_v38 = vpop.xlane.xlu0 %39 }
 0x17e   :  { %v41_v39 = vrot.slane %v40_v38, 4 }
 0x180   :  { %v42_v40 = vadd.f32 %v41_v39, %v40_v38 }
 0x181   :  { %v92_v41 = vpop.xlane.xlu1 %91 }
 0x182   :  { %v43_v42 = vrot.slane %v42_v40, 2  ;;  %v93_v43 = vrot.slane %v92_v41, 4 }
 0x184   :  { %v94_v44 = vadd.f32 %v93_v43, %v92_v41  ;;  %v44_v45 = vadd.f32 %v43_v42, %v42_v40 }
 0x186   :  { %v95_v46 = vrot.slane %v94_v44, 2  ;;  %v45_v47 = vrot.slane %v44_v45, 1 }
 0x188   :  { %v96_v48 = vadd.f32 %v95_v46, %v94_v44  ;;  %v46_v49 = vadd.f32 %v45_v47, %v44_v45 }
 0x18a   :  { %109 = vpush %v46_v49  ;;  %v97_v50 = vrot.slane %v96_v48, 1 }
 0x18c   :  { %v98_v51 = vadd.f32 %v97_v50, %v96_v48 }
 0x18e   :  { %111 = vpush %v98_v51 }
 0x1bb   :  { %s110_s17 = spop %109 }
 0x1bc   :  { %v100_v52 = vstv %s110_s17 }
 0x1bf   :  { %s112_s18 = spop %111 }
 0x1c0   :  { %v101_v53 = vstv %s112_s18 }
 0x1c1   :  { %v103_v54 = vsel %vm102_vm4, %v100_v52, %v101_v53 }
 0x1c2   :  { %104 = vst [vmem:[%s152_s2] sm:$0x3] %v103_v54 }

</bundles_post_ra>
